<compile_context>
chip_gen: v5e
topology: v5e:2x2
jax: 0.10.0
libtpu: 0.0.40
codegen_flags: <defaults>
</compile_context>

<pallas_src>
import jax
import jax.numpy as jnp
from jax import lax
from jax.experimental import pallas as pl
from jax.experimental.pallas import tpu as pltpu


def _round_up(v, m):
    return ((v + m - 1) // m) * m


def _pick_tile(n, target):
    """Largest tile <= target that divides n and keeps the sublane dim aligned."""
    if n <= target:
        return n
    for t in range(target, 7, -1):
        if n % t == 0 and t % 8 == 0:
            return t
    return n  # full extent is always a legal block dim


def _transformer_kernel(xq_ref, xkv_ref, scale_ref, shift_ref,
                        tw_ref, tb_ref, pgw_ref, pgb_ref, ww_ref, wb_ref,
                        o_ref,
                        xt_sc, m_sc, l_sc, acc_sc):
    ki = pl.program_id(2)
    nk = pl.num_programs(2)
    inter_p = acc_sc.shape[-1]

    @pl.when(ki == 0)
    def _init():
        # BN (folded, eval) + ReLU on the query tile, then the theta projection.
        xq = xq_ref[0]                                                  # (tq, Cp) f32
        fq = jnp.maximum(xq * scale_ref[...] + shift_ref[...], 0.0)
        xt = jnp.dot(fq.astype(jnp.bfloat16), tw_ref[...],
                     preferred_element_type=jnp.float32) + tb_ref[...]
        xt_sc[...] = xt.astype(jnp.bfloat16)
        m_sc[...] = jnp.full(m_sc.shape, -jnp.inf, jnp.float32)
        l_sc[...] = jnp.zeros(l_sc.shape, jnp.float32)
        acc_sc[...] = jnp.zeros(acc_sc.shape, jnp.float32)

    # BN + ReLU on the kv tile, then the fused phi/g projection (one MXU pass).
    xkv = xkv_ref[0]                                                    # (tk, Cp) f32
    fkv = jnp.maximum(xkv * scale_ref[...] + shift_ref[...], 0.0)
    xpg = jnp.dot(fkv.astype(jnp.bfloat16), pgw_ref[...],
                  preferred_element_type=jnp.float32) + pgb_ref[...]    # (tk, 2*Ip)
    # Ip is a multiple of 128, so this split is lane-tile aligned (no relayout).
    x_phi = xpg[:, :inter_p].astype(jnp.bfloat16)
    x_g = xpg[:, inter_p:].astype(jnp.bfloat16)

    # Scores: contract the shared last dim directly (A @ B^T, no transpose copy).
    s = lax.dot_general(xt_sc[...], x_phi,
                        dimension_numbers=(((1,), (1,)), ((), ())),
                        preferred_element_type=jnp.float32)             # (tq, tk)

    # Online softmax update (f32 statistics).
    m_prev = m_sc[...]
    m_new = jnp.maximum(m_prev, jnp.max(s, axis=-1, keepdims=True))
    alpha = jnp.exp(m_prev - m_new)
    p = jnp.exp(s - m_new)
    l_sc[...] = alpha * l_sc[...] + jnp.sum(p, axis=-1, keepdims=True)
    acc_sc[...] = alpha * acc_sc[...] + jnp.dot(
        p.astype(jnp.bfloat16), x_g, preferred_element_type=jnp.float32)
    m_sc[...] = m_new

    @pl.when(ki == nk - 1)
    def _finalize():
        # Fold the 1/l normalization in here (approx reciprocal -> EUP slot).
        y = acc_sc[...] * pl.reciprocal(l_sc[...], approx=True)         # (tq, Ip)
        wy = jnp.dot(y.astype(jnp.bfloat16), ww_ref[...],
                     preferred_element_type=jnp.float32) + wb_ref[...]  # (tq, Cp)
        o_ref[0] = xq_ref[0] + wy          # residual on the raw (pre-BN) input


def transformer_forward(x, params, *, q_tile=256, kv_tile=512):
    """x: (B, N, C) float32. params: dict of folded BN + linear weights
    (unpadded f32, linear weights stored already transposed as (in, out)).
    The (256, 512) tile default is sized for v7x's 64 MiB VMEM even at large C;
    on v5e/v6e with big VMEM and large N, larger q_tile (512+) is preferable."""
    B, N, C = x.shape
    inter = params["theta_w"].shape[1]

    # Pad channel dims to multiples of 128 so every matmul operand and the
    # output store are lane-dense (zero padding is exact for this computation).
    Cp = _round_up(C, 128)
    Ip = _round_up(inter, 128)

    def pad2(a, rows, cols):
        return jnp.pad(a, ((0, rows - a.shape[0]), (0, cols - a.shape[1])))

    scale = pad2(params["bn_scale"], 1, Cp)
    shift = pad2(params["bn_shift"], 1, Cp)
    theta_w = pad2(params["theta_w"], Cp, Ip).astype(jnp.bfloat16)
    theta_b = pad2(params["theta_b"], 1, Ip)
    pg_w = jnp.concatenate(                      # fused phi/g weight: (Cp, 2*Ip)
        [pad2(params["phi_w"], Cp, Ip), pad2(params["g_w"], Cp, Ip)],
        axis=1).astype(jnp.bfloat16)
    pg_b = jnp.concatenate(
        [pad2(params["phi_b"], 1, Ip), pad2(params["g_b"], 1, Ip)], axis=1)
    W_w = pad2(params["W_w"], Ip, Cp).astype(jnp.bfloat16)
    W_b = pad2(params["W_b"], 1, Cp)

    x_pad = jnp.pad(x, ((0, 0), (0, 0), (0, Cp - C)))

    tq = _pick_tile(N, q_tile)
    tk = _pick_tile(N, kv_tile)
    nq = N // tq
    nk = N // tk

    const2 = lambda b, qi, ki: (0, 0)

    flops = 2 * B * N * (Cp * Ip              # theta projection
                         + nq * Cp * 2 * Ip   # fused phi/g (recomputed per q tile)
                         + 2 * N * Ip         # scores + attention @ g
                         + Ip * Cp)           # final W projection
    bytes_accessed = 4 * B * N * Cp * (2 + nq) + 2 * (4 * Cp * Ip + 3 * Cp + 3 * Ip)

    out = pl.pallas_call(
        _transformer_kernel,
        out_shape=jax.ShapeDtypeStruct((B, N, Cp), jnp.float32),
        grid_spec=pltpu.PrefetchScalarGridSpec(
            num_scalar_prefetch=0,
            grid=(B, nq, nk),
            in_specs=[
                pl.BlockSpec((1, tq, Cp), lambda b, qi, ki: (b, qi, 0)),  # x (query tile)
                pl.BlockSpec((1, tk, Cp), lambda b, qi, ki: (b, ki, 0)),  # x (kv tile)
                pl.BlockSpec((1, Cp), const2),        # bn scale (f32)
                pl.BlockSpec((1, Cp), const2),        # bn shift (f32)
                pl.BlockSpec((Cp, Ip), const2),       # theta W^T (bf16)
                pl.BlockSpec((1, Ip), const2),        # theta b (f32)
                pl.BlockSpec((Cp, 2 * Ip), const2),   # fused phi/g W^T (bf16)
                pl.BlockSpec((1, 2 * Ip), const2),    # fused phi/g b (f32)
                pl.BlockSpec((Ip, Cp), const2),       # W W^T (bf16)
                pl.BlockSpec((1, Cp), const2),        # W b (f32)
            ],
            out_specs=pl.BlockSpec((1, tq, Cp), lambda b, qi, ki: (b, qi, 0)),
            scratch_shapes=[
                pltpu.VMEM((tq, Ip), jnp.bfloat16),   # cached theta projection
                pltpu.VMEM((tq, 1), jnp.float32),     # m (running max)
                pltpu.VMEM((tq, 1), jnp.float32),     # l (running denominator)
                pltpu.VMEM((tq, Ip), jnp.float32),    # un-normalized output acc
            ]),
        compiler_params=pltpu.CompilerParams(
            dimension_semantics=("parallel", "parallel", "arbitrary"),
            vmem_limit_bytes=32 * 1024 * 1024),
        cost_estimate=pl.CostEstimate(
            flops=int(flops),
            transcendentals=int(B * N * N),
            bytes_accessed=int(bytes_accessed)),
    )(x_pad, x_pad, scale, shift, theta_w, theta_b, pg_w, pg_b, W_w, W_b)

    return out[:, :, :C]


def make_params(key, in_channels):
    """Deterministic synthetic parameters matching the module's __init__ shapes."""
    inter = in_channels // 2
    ks = jax.random.split(key, 12)
    u = lambda k, shape, s=0.1: jax.random.uniform(k, shape, jnp.float32, -s, s)

    # BatchNorm1d(in_channels): gamma, beta, running_mean, running_var (eval mode)
    gamma = 1.0 + u(ks[0], (in_channels,))
    beta = u(ks[1], (in_channels,))
    running_mean = u(ks[2], (in_channels,))
    running_var = 1.0 + jnp.abs(u(ks[3], (in_channels,)))
    eps = 1e-5
    scale = gamma / jnp.sqrt(running_var + eps)
    shift = beta - running_mean * scale

    return {
        "bn_scale": scale.reshape(1, in_channels),
        "bn_shift": shift.reshape(1, in_channels),
        # Linear weights stored already transposed: (in, out)
        "theta_w": u(ks[4], (in_channels, inter)),
        "theta_b": u(ks[5], (1, inter)),
        "phi_w":   u(ks[6], (in_channels, inter)),
        "phi_b":   u(ks[7], (1, inter)),
        "g_w":     u(ks[8], (in_channels, inter)),
        "g_b":     u(ks[9], (1, inter)),
        "W_w":     u(ks[10], (inter, in_channels)),
        "W_b":     u(ks[11], (1, in_channels)),
    }


def reference_forward(x, params):
    """Pure-JAX reference mirroring the PyTorch forward (eval-mode BN) with the
    same bf16-operand / f32-accumulation matmul policy as the kernel."""
    bf16, f32 = jnp.bfloat16, jnp.float32
    feat = jnp.maximum(x * params["bn_scale"] + params["bn_shift"], 0.0)
    fb = feat.astype(bf16)
    xt = jnp.dot(fb, params["theta_w"].astype(bf16),
                 preferred_element_type=f32) + params["theta_b"]
    xph = jnp.dot(fb, params["phi_w"].astype(bf16),
                  preferred_element_type=f32) + params["phi_b"]
    xg = jnp.dot(fb, params["g_w"].astype(bf16),
                 preferred_element_type=f32) + params["g_b"]
    attn = jnp.einsum("bnd,bmd->bnm", xt.astype(bf16), xph.astype(bf16),
                      preferred_element_type=f32)
    soft = jax.nn.softmax(attn, axis=-1)
    y = jnp.einsum("bnm,bmd->bnd", soft.astype(bf16), xg.astype(bf16),
                   preferred_element_type=f32)
    wy = jnp.dot(y.astype(bf16), params["W_w"].astype(bf16),
                 preferred_element_type=f32) + params["W_b"]
    return x + wy


if __name__ == "__main__":
    B, N, C = 2, 8, 32          # batch, sequence, in_channels (inter_channels = 16)
    key = jax.random.PRNGKey(0)
    kx, kp = jax.random.split(key)

    x = jax.random.normal(kx, (B, N, C), jnp.float32)
    params = make_params(kp, C)

    out = transformer_forward(x, params)
    out = jax.block_until_ready(out)

    ref = reference_forward(x, params)
    assert out.shape == (B, N, C)
    assert jnp.allclose(out, ref, atol=5e-3, rtol=5e-3), "mismatch vs JAX reference"

    print("KERNEL_OK")
</pallas_src>

<mosaic_0001>
module attributes {stable_mosaic.version = 11 : i64} {
  func.func @_transformer_kernel(%arg0: i32, %arg1: i32, %arg2: i32, %arg3: memref<1x8x128xf32, #tpu.memory_space<vmem>>, %arg4: memref<1x8x128xf32, #tpu.memory_space<vmem>>, %arg5: memref<1x128xf32, #tpu.memory_space<vmem>>, %arg6: memref<1x128xf32, #tpu.memory_space<vmem>>, %arg7: memref<128x128xbf16, #tpu.memory_space<vmem>>, %arg8: memref<1x128xf32, #tpu.memory_space<vmem>>, %arg9: memref<128x256xbf16, #tpu.memory_space<vmem>>, %arg10: memref<1x256xf32, #tpu.memory_space<vmem>>, %arg11: memref<128x128xbf16, #tpu.memory_space<vmem>>, %arg12: memref<1x128xf32, #tpu.memory_space<vmem>>, %arg13: memref<1x8x128xf32, #tpu.memory_space<vmem>>, %arg14: memref<8x128xbf16, #tpu.memory_space<vmem>>, %arg15: memref<8x1xf32, #tpu.memory_space<vmem>>, %arg16: memref<8x1xf32, #tpu.memory_space<vmem>>, %arg17: memref<8x128xf32, #tpu.memory_space<vmem>>) attributes {dimension_semantics = [#tpu.dimension_semantics<parallel>, #tpu.dimension_semantics<parallel>, #tpu.dimension_semantics<arbitrary>], iteration_bounds = array<i64: 2, 1, 1>, scalar_prefetch = 0 : i64, scratch_operands = 4 : i64, tpu.core_type = #tpu.core_type<tc>, window_params = [{transform_indices = @transform_0, window_bounds = array<i64: 1, 8, 128>}, {transform_indices = @transform_1, window_bounds = array<i64: 1, 8, 128>}, {pipeline_mode = #tpu.pipeline_mode<synchronous>, transform_indices = @transform_2, window_bounds = array<i64: 1, 128>}, {pipeline_mode = #tpu.pipeline_mode<synchronous>, transform_indices = @transform_3, window_bounds = array<i64: 1, 128>}, {pipeline_mode = #tpu.pipeline_mode<synchronous>, transform_indices = @transform_4, window_bounds = array<i64: 128, 128>}, {pipeline_mode = #tpu.pipeline_mode<synchronous>, transform_indices = @transform_5, window_bounds = array<i64: 1, 128>}, {pipeline_mode = #tpu.pipeline_mode<synchronous>, transform_indices = @transform_6, window_bounds = array<i64: 128, 256>}, {pipeline_mode = #tpu.pipeline_mode<synchronous>, transform_indices = @transform_7, window_bounds = array<i64: 1, 256>}, {pipeline_mode = #tpu.pipeline_mode<synchronous>, transform_indices = @transform_8, window_bounds = array<i64: 128, 128>}, {pipeline_mode = #tpu.pipeline_mode<synchronous>, transform_indices = @transform_9, window_bounds = array<i64: 1, 128>}, {transform_indices = @transform_10, window_bounds = array<i64: 1, 8, 128>}]} {
    %c0_i32 = arith.constant 0 : i32
    %0 = arith.cmpi eq, %arg2, %c0_i32 : i32
    %1 = arith.extui %0 : i1 to i32
    %c0_i32_0 = arith.constant 0 : i32
    %2 = arith.cmpi ne, %1, %c0_i32_0 : i32
    scf.if %2 {
      %c0_32 = arith.constant 0 : index
      %c0_33 = arith.constant 0 : index
      %c0_34 = arith.constant 0 : index
      %51 = vector.load %arg3[%c0_32, %c0_33, %c0_34] : memref<1x8x128xf32, #tpu.memory_space<vmem>>, vector<1x8x128xf32>
      %52 = vector.shape_cast %51 : vector<1x8x128xf32> to vector<8x128xf32>
      %c0_35 = arith.constant 0 : index
      %c0_36 = arith.constant 0 : index
      %53 = vector.load %arg5[%c0_35, %c0_36] : memref<1x128xf32, #tpu.memory_space<vmem>>, vector<1x128xf32>
      %54 = vector.broadcast %53 : vector<1x128xf32> to vector<8x128xf32>
      %55 = arith.mulf %52, %54 : vector<8x128xf32>
      %c0_37 = arith.constant 0 : index
      %c0_38 = arith.constant 0 : index
      %56 = vector.load %arg6[%c0_37, %c0_38] : memref<1x128xf32, #tpu.memory_space<vmem>>, vector<1x128xf32>
      %57 = vector.broadcast %56 : vector<1x128xf32> to vector<8x128xf32>
      %58 = arith.addf %55, %57 : vector<8x128xf32>
      %cst_39 = arith.constant 0.000000e+00 : f32
      %59 = vector.broadcast %cst_39 : f32 to vector<8x128xf32>
      %60 = arith.maximumf %58, %59 : vector<8x128xf32>
      %61 = arith.truncf %60 : vector<8x128xf32> to vector<8x128xbf16>
      %c0_40 = arith.constant 0 : index
      %c0_41 = arith.constant 0 : index
      %62 = vector.load %arg7[%c0_40, %c0_41] : memref<128x128xbf16, #tpu.memory_space<vmem>>, vector<128x128xbf16>
      %cst_42 = arith.constant dense<0.000000e+00> : vector<8x128xf32>
      %63 = tpu.matmul %61, %62, %cst_42 {dimension_numbers = #tpu.dot_dimension_numbers<[1], [0], [0], [1], [0, 0, 1, 1], [], []>} : vector<8x128xbf16>, vector<128x128xbf16>, vector<8x128xf32> -> vector<8x128xf32>
      %c0_43 = arith.constant 0 : index
      %c0_44 = arith.constant 0 : index
      %64 = vector.load %arg8[%c0_43, %c0_44] : memref<1x128xf32, #tpu.memory_space<vmem>>, vector<1x128xf32>
      %65 = vector.broadcast %64 : vector<1x128xf32> to vector<8x128xf32>
      %66 = arith.addf %63, %65 : vector<8x128xf32>
      %67 = arith.truncf %66 : vector<8x128xf32> to vector<8x128xbf16>
      %c0_45 = arith.constant 0 : index
      %c0_46 = arith.constant 0 : index
      %68 = vector.load %arg14[%c0_45, %c0_46] : memref<8x128xbf16, #tpu.memory_space<vmem>>, vector<8x128xbf16>
      tpu.vector_store %arg14[%c0_45, %c0_46], %67 {strides = array<i32>} : memref<8x128xbf16, #tpu.memory_space<vmem>>, vector<8x128xbf16>,
      %cst_47 = arith.constant 0xFF800000 : f32
      %69 = vector.broadcast %cst_47 : f32 to vector<8x1xf32>
      %c0_48 = arith.constant 0 : index
      %c0_49 = arith.constant 0 : index
      %70 = vector.load %arg15[%c0_48, %c0_49] : memref<8x1xf32, #tpu.memory_space<vmem>>, vector<8x1xf32>
      tpu.vector_store %arg15[%c0_48, %c0_49], %69 {strides = array<i32>} : memref<8x1xf32, #tpu.memory_space<vmem>>, vector<8x1xf32>,
      %cst_50 = arith.constant 0.000000e+00 : f32
      %71 = vector.broadcast %cst_50 : f32 to vector<8x1xf32>
      %c0_51 = arith.constant 0 : index
      %c0_52 = arith.constant 0 : index
      %72 = vector.load %arg16[%c0_51, %c0_52] : memref<8x1xf32, #tpu.memory_space<vmem>>, vector<8x1xf32>
      tpu.vector_store %arg16[%c0_51, %c0_52], %71 {strides = array<i32>} : memref<8x1xf32, #tpu.memory_space<vmem>>, vector<8x1xf32>,
      %cst_53 = arith.constant 0.000000e+00 : f32
      %73 = vector.broadcast %cst_53 : f32 to vector<8x128xf32>
      %c0_54 = arith.constant 0 : index
      %c0_55 = arith.constant 0 : index
      %74 = vector.load %arg17[%c0_54, %c0_55] : memref<8x128xf32, #tpu.memory_space<vmem>>, vector<8x128xf32>
      tpu.vector_store %arg17[%c0_54, %c0_55], %73 {strides = array<i32>} : memref<8x128xf32, #tpu.memory_space<vmem>>, vector<8x128xf32>,
    } else {
    }
    %c0 = arith.constant 0 : index
    %c0_1 = arith.constant 0 : index
    %c0_2 = arith.constant 0 : index
    %3 = vector.load %arg4[%c0, %c0_1, %c0_2] : memref<1x8x128xf32, #tpu.memory_space<vmem>>, vector<1x8x128xf32>
    %4 = vector.shape_cast %3 : vector<1x8x128xf32> to vector<8x128xf32>
    %c0_3 = arith.constant 0 : index
    %c0_4 = arith.constant 0 : index
    %5 = vector.load %arg5[%c0_3, %c0_4] : memref<1x128xf32, #tpu.memory_space<vmem>>, vector<1x128xf32>
    %6 = vector.broadcast %5 : vector<1x128xf32> to vector<8x128xf32>
    %7 = arith.mulf %4, %6 : vector<8x128xf32>
    %c0_5 = arith.constant 0 : index
    %c0_6 = arith.constant 0 : index
    %8 = vector.load %arg6[%c0_5, %c0_6] : memref<1x128xf32, #tpu.memory_space<vmem>>, vector<1x128xf32>
    %9 = vector.broadcast %8 : vector<1x128xf32> to vector<8x128xf32>
    %10 = arith.addf %7, %9 : vector<8x128xf32>
    %cst = arith.constant 0.000000e+00 : f32
    %11 = vector.broadcast %cst : f32 to vector<8x128xf32>
    %12 = arith.maximumf %10, %11 : vector<8x128xf32>
    %13 = arith.truncf %12 : vector<8x128xf32> to vector<8x128xbf16>
    %c0_7 = arith.constant 0 : index
    %c0_8 = arith.constant 0 : index
    %14 = vector.load %arg9[%c0_7, %c0_8] : memref<128x256xbf16, #tpu.memory_space<vmem>>, vector<128x256xbf16>
    %cst_9 = arith.constant dense<0.000000e+00> : vector<8x256xf32>
    %15 = tpu.matmul %13, %14, %cst_9 {dimension_numbers = #tpu.dot_dimension_numbers<[1], [0], [0], [1], [0, 0, 1, 1], [], []>} : vector<8x128xbf16>, vector<128x256xbf16>, vector<8x256xf32> -> vector<8x256xf32>
    %c0_10 = arith.constant 0 : index
    %c0_11 = arith.constant 0 : index
    %16 = vector.load %arg10[%c0_10, %c0_11] : memref<1x256xf32, #tpu.memory_space<vmem>>, vector<1x256xf32>
    %17 = vector.broadcast %16 : vector<1x256xf32> to vector<8x256xf32>
    %18 = arith.addf %15, %17 : vector<8x256xf32>
    %19 = vector.extract_strided_slice %18 {offsets = [0, 0], sizes = [8, 128], strides = [1, 1]} : vector<8x256xf32> to vector<8x128xf32>
    %20 = arith.truncf %19 : vector<8x128xf32> to vector<8x128xbf16>
    %21 = vector.extract_strided_slice %18 {offsets = [0, 128], sizes = [8, 128], strides = [1, 1]} : vector<8x256xf32> to vector<8x128xf32>
    %22 = arith.truncf %21 : vector<8x128xf32> to vector<8x128xbf16>
    %c0_12 = arith.constant 0 : index
    %c0_13 = arith.constant 0 : index
    %23 = vector.load %arg14[%c0_12, %c0_13] : memref<8x128xbf16, #tpu.memory_space<vmem>>, vector<8x128xbf16>
    %cst_14 = arith.constant dense<0.000000e+00> : vector<8x8xf32>
    %24 = tpu.matmul %23, %20, %cst_14 {dimension_numbers = #tpu.dot_dimension_numbers<[1], [1], [0], [0], [0, 0, 1, 0], [], []>} : vector<8x128xbf16>, vector<8x128xbf16>, vector<8x8xf32> -> vector<8x8xf32>
    %c0_15 = arith.constant 0 : index
    %c0_16 = arith.constant 0 : index
    %25 = vector.load %arg15[%c0_15, %c0_16] : memref<8x1xf32, #tpu.memory_space<vmem>>, vector<8x1xf32>
    %cst_17 = arith.constant dense<0xFF800000> : vector<8xf32>
    %26 = vector.multi_reduction <maximumf>, %24, %cst_17 [1] : vector<8x8xf32> to vector<8xf32>
    %27 = vector.shape_cast %26 : vector<8xf32> to vector<8x1xf32>
    %28 = arith.maximumf %25, %27 : vector<8x1xf32>
    %29 = arith.subf %25, %28 : vector<8x1xf32>
    %30 = math.exp %29 : vector<8x1xf32>
    %31 = vector.broadcast %28 : vector<8x1xf32> to vector<8x8xf32>
    %32 = arith.subf %24, %31 : vector<8x8xf32>
    %33 = math.exp %32 : vector<8x8xf32>
    %c0_18 = arith.constant 0 : index
    %c0_19 = arith.constant 0 : index
    %34 = vector.load %arg16[%c0_18, %c0_19] : memref<8x1xf32, #tpu.memory_space<vmem>>, vector<8x1xf32>
    %35 = arith.mulf %30, %34 : vector<8x1xf32>
    %cst_20 = arith.constant dense<0.000000e+00> : vector<8xf32>
    %36 = vector.multi_reduction <add>, %33, %cst_20 [1] : vector<8x8xf32> to vector<8xf32>
    %37 = vector.shape_cast %36 : vector<8xf32> to vector<8x1xf32>
    %38 = arith.addf %35, %37 : vector<8x1xf32>
    %c0_21 = arith.constant 0 : index
    %c0_22 = arith.constant 0 : index
    %39 = vector.load %arg16[%c0_21, %c0_22] : memref<8x1xf32, #tpu.memory_space<vmem>>, vector<8x1xf32>
    tpu.vector_store %arg16[%c0_21, %c0_22], %38 {strides = array<i32>} : memref<8x1xf32, #tpu.memory_space<vmem>>, vector<8x1xf32>,
    %c0_23 = arith.constant 0 : index
    %c0_24 = arith.constant 0 : index
    %40 = vector.load %arg17[%c0_23, %c0_24] : memref<8x128xf32, #tpu.memory_space<vmem>>, vector<8x128xf32>
    %41 = vector.broadcast %30 : vector<8x1xf32> to vector<8x128xf32>
    %42 = arith.mulf %41, %40 : vector<8x128xf32>
    %43 = arith.truncf %33 : vector<8x8xf32> to vector<8x8xbf16>
    %cst_25 = arith.constant dense<0.000000e+00> : vector<8x128xf32>
    %44 = tpu.matmul %43, %22, %cst_25 {dimension_numbers = #tpu.dot_dimension_numbers<[1], [0], [0], [1], [0, 0, 1, 1], [], []>} : vector<8x8xbf16>, vector<8x128xbf16>, vector<8x128xf32> -> vector<8x128xf32>
    %45 = arith.addf %42, %44 : vector<8x128xf32>
    %c0_26 = arith.constant 0 : index
    %c0_27 = arith.constant 0 : index
    %46 = vector.load %arg17[%c0_26, %c0_27] : memref<8x128xf32, #tpu.memory_space<vmem>>, vector<8x128xf32>
    tpu.vector_store %arg17[%c0_26, %c0_27], %45 {strides = array<i32>} : memref<8x128xf32, #tpu.memory_space<vmem>>, vector<8x128xf32>,
    %c0_28 = arith.constant 0 : index
    %c0_29 = arith.constant 0 : index
    %47 = vector.load %arg15[%c0_28, %c0_29] : memref<8x1xf32, #tpu.memory_space<vmem>>, vector<8x1xf32>
    tpu.vector_store %arg15[%c0_28, %c0_29], %28 {strides = array<i32>} : memref<8x1xf32, #tpu.memory_space<vmem>>, vector<8x1xf32>,
    %c0_i32_30 = arith.constant 0 : i32
    %48 = arith.cmpi eq, %arg2, %c0_i32_30 : i32
    %49 = arith.extui %48 : i1 to i32
    %c0_i32_31 = arith.constant 0 : i32
    %50 = arith.cmpi ne, %49, %c0_i32_31 : i32
    scf.if %50 {
      %c0_32 = arith.constant 0 : index
      %c0_33 = arith.constant 0 : index
      %51 = vector.load %arg17[%c0_32, %c0_33] : memref<8x128xf32, #tpu.memory_space<vmem>>, vector<8x128xf32>
      %c0_34 = arith.constant 0 : index
      %c0_35 = arith.constant 0 : index
      %52 = vector.load %arg16[%c0_34, %c0_35] : memref<8x1xf32, #tpu.memory_space<vmem>>, vector<8x1xf32>
      %53 = tpu.reciprocal %52 {approx = true} : vector<8x1xf32> -> vector<8x1xf32>
      %54 = vector.broadcast %53 : vector<8x1xf32> to vector<8x128xf32>
      %55 = arith.mulf %51, %54 : vector<8x128xf32>
      %56 = arith.truncf %55 : vector<8x128xf32> to vector<8x128xbf16>
      %c0_36 = arith.constant 0 : index
      %c0_37 = arith.constant 0 : index
      %57 = vector.load %arg11[%c0_36, %c0_37] : memref<128x128xbf16, #tpu.memory_space<vmem>>, vector<128x128xbf16>
      %cst_38 = arith.constant dense<0.000000e+00> : vector<8x128xf32>
      %58 = tpu.matmul %56, %57, %cst_38 {dimension_numbers = #tpu.dot_dimension_numbers<[1], [0], [0], [1], [0, 0, 1, 1], [], []>} : vector<8x128xbf16>, vector<128x128xbf16>, vector<8x128xf32> -> vector<8x128xf32>
      %c0_39 = arith.constant 0 : index
      %c0_40 = arith.constant 0 : index
      %59 = vector.load %arg12[%c0_39, %c0_40] : memref<1x128xf32, #tpu.memory_space<vmem>>, vector<1x128xf32>
      %60 = vector.broadcast %59 : vector<1x128xf32> to vector<8x128xf32>
      %61 = arith.addf %58, %60 : vector<8x128xf32>
      %c0_41 = arith.constant 0 : index
      %c0_42 = arith.constant 0 : index
      %c0_43 = arith.constant 0 : index
      %62 = vector.load %arg3[%c0_41, %c0_42, %c0_43] : memref<1x8x128xf32, #tpu.memory_space<vmem>>, vector<1x8x128xf32>
      %63 = vector.shape_cast %62 : vector<1x8x128xf32> to vector<8x128xf32>
      %64 = arith.addf %63, %61 : vector<8x128xf32>
      %c0_44 = arith.constant 0 : index
      %c0_45 = arith.constant 0 : index
      %c0_46 = arith.constant 0 : index
      %65 = vector.load %arg13[%c0_44, %c0_45, %c0_46] : memref<1x8x128xf32, #tpu.memory_space<vmem>>, vector<1x8x128xf32>
      %66 = vector.shape_cast %65 : vector<1x8x128xf32> to vector<8x128xf32>
      %67 = vector.shape_cast %64 : vector<8x128xf32> to vector<1x8x128xf32>
      tpu.vector_store %arg13[%c0_44, %c0_45, %c0_46], %67 {strides = array<i32>} : memref<1x8x128xf32, #tpu.memory_space<vmem>>, vector<1x8x128xf32>,
    } else {
    }
    return
  }
  func.func @transform_0(%arg0: i32, %arg1: i32, %arg2: i32) -> (i32, i32, i32) {
    %c0_i32 = arith.constant 0 : i32
    %c0_i32_0 = arith.constant 0 : i32
    return %arg0, %arg1, %c0_i32 : i32, i32, i32
  }
  func.func @transform_1(%arg0: i32, %arg1: i32, %arg2: i32) -> (i32, i32, i32) {
    %c0_i32 = arith.constant 0 : i32
    %c0_i32_0 = arith.constant 0 : i32
    return %arg0, %arg2, %c0_i32 : i32, i32, i32
  }
  func.func @transform_2(%arg0: i32, %arg1: i32, %arg2: i32) -> (i32, i32) {
    %c0_i32 = arith.constant 0 : i32
    %c0_i32_0 = arith.constant 0 : i32
    %c0_i32_1 = arith.constant 0 : i32
    return %c0_i32, %c0_i32_0 : i32, i32
  }
  func.func @transform_3(%arg0: i32, %arg1: i32, %arg2: i32) -> (i32, i32) {
    %c0_i32 = arith.constant 0 : i32
    %c0_i32_0 = arith.constant 0 : i32
    %c0_i32_1 = arith.constant 0 : i32
    return %c0_i32, %c0_i32_0 : i32, i32
  }
  func.func @transform_4(%arg0: i32, %arg1: i32, %arg2: i32) -> (i32, i32) {
    %c0_i32 = arith.constant 0 : i32
    %c0_i32_0 = arith.constant 0 : i32
    %c0_i32_1 = arith.constant 0 : i32
    return %c0_i32, %c0_i32_0 : i32, i32
  }
  func.func @transform_5(%arg0: i32, %arg1: i32, %arg2: i32) -> (i32, i32) {
    %c0_i32 = arith.constant 0 : i32
    %c0_i32_0 = arith.constant 0 : i32
    %c0_i32_1 = arith.constant 0 : i32
    return %c0_i32, %c0_i32_0 : i32, i32
  }
  func.func @transform_6(%arg0: i32, %arg1: i32, %arg2: i32) -> (i32, i32) {
    %c0_i32 = arith.constant 0 : i32
    %c0_i32_0 = arith.constant 0 : i32
    %c0_i32_1 = arith.constant 0 : i32
    return %c0_i32, %c0_i32_0 : i32, i32
  }
  func.func @transform_7(%arg0: i32, %arg1: i32, %arg2: i32) -> (i32, i32) {
    %c0_i32 = arith.constant 0 : i32
    %c0_i32_0 = arith.constant 0 : i32
    %c0_i32_1 = arith.constant 0 : i32
    return %c0_i32, %c0_i32_0 : i32, i32
  }
  func.func @transform_8(%arg0: i32, %arg1: i32, %arg2: i32) -> (i32, i32) {
    %c0_i32 = arith.constant 0 : i32
    %c0_i32_0 = arith.constant 0 : i32
    %c0_i32_1 = arith.constant 0 : i32
    return %c0_i32, %c0_i32_0 : i32, i32
  }
  func.func @transform_9(%arg0: i32, %arg1: i32, %arg2: i32) -> (i32, i32) {
    %c0_i32 = arith.constant 0 : i32
    %c0_i32_0 = arith.constant 0 : i32
    %c0_i32_1 = arith.constant 0 : i32
    return %c0_i32, %c0_i32_0 : i32, i32
  }
  func.func @transform_10(%arg0: i32, %arg1: i32, %arg2: i32) -> (i32, i32, i32) {
    %c0_i32 = arith.constant 0 : i32
    %c0_i32_0 = arith.constant 0 : i32
    return %arg0, %arg1, %c0_i32 : i32, i32, i32
  }
}

</mosaic_0001>

<bundles_post_ra>
// kernel: tpu_custom_call.1
= control target key start
LH: loop header
LB: loop body
LE: loop exit
PB: predicated region body
PF: predicated region fallthrough
CT: control target
= control target key end

     0   :  { %s1965_s0 = inlined_call_operand.hbm [shape: f32[2,8,128], index: 0, kind: input, shape index: {}]   ;;  %s1966_s1 = inlined_call_operand.hbm [shape: f32[2,8,128], index: 1, kind: input, shape index: {}]   ;;  %s1967_s2 = inlined_call_operand.vmem [shape: f32[1,128], index: 2, kind: input, shape index: {}]   ;;  %s1968_s3 = inlined_call_operand.hbm [shape: f32[1,128], index: 3, kind: input, shape index: {}]   ;;  %s1969_s4 = inlined_call_operand.hbm [shape: bf16[128,128], index: 4, kind: input, shape index: {}]   ;;  %s1970_s5 = inlined_call_operand.vmem [shape: f32[1,128], index: 5, kind: input, shape index: {}]   ;;  %s1971_s6 = inlined_call_operand.hbm [shape: bf16[128,256], index: 6, kind: input, shape index: {}]   ;;  %s1972_s7 = inlined_call_operand.vmem [shape: f32[1,256], index: 7, kind: input, shape index: {}]   ;;  %s1973_s8 = inlined_call_operand.hbm [shape: bf16[128,128], index: 8, kind: input, shape index: {}]   ;;  %s1974_s9 = inlined_call_operand.vmem [shape: f32[1,128], index: 9, kind: input, shape index: {}]   ;;  %s1975_s10 = inlined_call_operand.hbm [shape: f32[2,8,128], index: 10, kind: output, shape index: {}]  }
   0x1   :  { %1983 = sst [smem:[#allocation31_spill]] %s1968_s3 }
   0x2   :  { %1984 = sst [smem:[#allocation32_spill]] %s1969_s4 }
   0x3   :  { %1985 = sst [smem:[#allocation33_spill]] %s1971_s6 }
   0x4   :  { %1986 = sst [smem:[#allocation34_spill]] %s1973_s8 }
   0x5   :  { %15 = vsyncpa [#allocation7], 0 }
   0x6   :  { %17 = vsyncpa [#allocation7 + $0x1], 0 }
   0x7   :  { %18 = vsyncpa [#allocation10], 0 }
   0x8   :  { %20 = vsyncpa [#allocation10 + $0x1], 0 }
   0x9   :  { %21 = vsyncpa [#allocation13], 0 }
   0xa   :  { %22 = vsyncpa [#allocation16], 0 }
   0xb   :  { %23 = vsyncpa [#allocation8], 0 }
   0xc   :  { %25 = vsyncpa [#allocation8 + $0x1], 0  ;;  %s1745_s13 = smov 0   ;;  %s1747_s14 = smov 0  }
   0xd   :  { %s1749_s15 = smov 0   ;;  %s1751_s16 = smov 0  }
   0xe   :  { %s1753_s17 = smov 0   ;;  %s1755_s18 = smov 0  }
   0xf LB: > { %1987 = sst [smem:[#allocation24_spill]] %s1657_s13  ;;  %s1776_s19 = sadd.s32 4294967295, %s1677_s18   ;;  %s1677_s18 = sphi %s1755_s18, %s31_s18   ;;  %s1673_s17 = sphi %s1753_s17, %s2010_s17   ;;  %s1669_s16 = sphi %s1751_s16, %s2009_s16   ;;  %s1665_s15 = sphi %s1749_s15, %s2008_s15   ;;  %s1661_s14 = sphi %s1747_s14, %s2012_s14   ;;  %s1657_s13 = sphi %s1745_s13, %s2011_s13  }
  0x10   : > { %1988 = sst [smem:[#allocation25_spill]] %s1665_s15  ;;  %p1086_p0 = scmp.ge.s32.totalorder %s1677_s18, 1 }
  0x11   : > { %1989 = sst [smem:[#allocation26_spill]] %s1673_s17  ;;  %p73_p1 = scmp.eq.s32.totalorder %s1776_s19, 0 }
  0x12   : > { %p307_p2 = scmp.lt.s32.totalorder %s1677_s18, 3  ;;  %s1990_s3 = sld [smem:[#allocation31_spill]] }
  0x13   : > { %p1091_p4 = scmp.ge.s32.totalorder %s1677_s18, 2  ;;  %s1679_s24 = smov [#allocation11]  }
  0x14   : > { %p1784_p3 = pnand %p1086_p0, %p307_p2  ;;  %s324_s25 = sshll.u32 %s1679_s24, 4  ;;  %s325_s25 = int_to_ptr.vmem [resolvable:$true] %s324_s25 }
  0x15   : > { %s1992_s4 = sld [smem:[#allocation32_spill]]  ;;  %s1680_s30 = smov [#allocation12]  }
  0x16   : > { %p1291_p5 = pneg %p1784_p3  ;;  %s335_s11 = sshll.u32 %s1680_s30, 4  ;;  %s336_s11 = int_to_ptr.vmem [resolvable:$true] %s335_s11 }
  0x17   : > { %s1681_s12 = smov 64   ;;  %s1682_s20 = smov 4  }
  0x18   : > { %s322_s22 = sshll.u32 %s1990_s3, 4  ;;  %p1796_p6 = pnand %p1291_p5, %p73_p1  ;;  %s323_s22 = int_to_ptr.hbm [resolvable:$true] %s322_s22 }
  0x19   : > { %s1994_s6 = sld [smem:[#allocation33_spill]]  ;;  %s1683_s27 = smov [#allocation14]  }
  0x1a   : > { %1294 = dma.hbm_to_vmem [thread:$0]  (!%p1796_p6), %s323_s22, 16, %s325_s25, [#allocation10]  }
  0x1b   : > { %s333_s28 = sshll.u32 %s1992_s4, 4  ;;  %s352_s30 = sshll.u32 %s1683_s27, 4  ;;  %s334_s28 = int_to_ptr.hbm [resolvable:$true] %s333_s28  ;;  %s353_s30 = int_to_ptr.vmem [resolvable:$true] %s352_s30 }
  0x1c   : > { %1297 = dma.hbm_to_vmem [thread:$0]  (!%p1796_p6), %s334_s28, 1024, %s336_s11, [#allocation13], %s1681_s12, %s1681_s12, %s1682_s20  }
  0x1d   : > { %s1995_s8 = sld [smem:[#allocation34_spill]]  ;;  %s1684_s4 = smov 128  }
  0x1e   : > { %s1685_s28 = smov 8   ;;  %s1686_s11 = smov [#allocation15]  }
  0x1f   : > { %s350_s26 = sshll.u32 %s1994_s6, 4  ;;  %s369_s21 = sshll.u32 %s1686_s11, 4  ;;  %s351_s26 = int_to_ptr.hbm [resolvable:$true] %s350_s26  ;;  %s370_s21 = int_to_ptr.vmem [resolvable:$true] %s369_s21 }
  0x20   : > { %1300 = dma.hbm_to_vmem [thread:$0]  (!%p1796_p6), %s351_s26, 2048, %s353_s30, [#allocation13], %s1684_s4, %s1684_s4, %s1685_s28  }
  0x21   : > { %s1085_s24 = sadd.s32 4294967294, %s1677_s18   ;;  %s50_s27 = sadd.s32 1, %s1673_s17 }
  0x22   : > { %p52_p7 = scmp.ge.s32.totalorder %s50_s27, 2  ;;  %s59_s22 = sadd.s32 1, %s1665_s15 }
  0x23   : > { %s367_s3 = sshll.u32 %s1995_s8, 4  ;;  %p66_p8 = scmp.ne.s32.totalorder %s1665_s15, %s1661_s14  ;;  %s368_s3 = int_to_ptr.hbm [resolvable:$true] %s367_s3 }
  0x24   : > { %1303 = dma.hbm_to_vmem [thread:$0]  (!%p1796_p6), %s368_s3, 1024, %s370_s21, [#allocation16], %s1681_s12, %s1681_s12, %s1682_s20  }
  0x25   : > { %p67_p9 = scmp.eq.s32.totalorder %s1677_s18, 0  ;;  %s2014_s27 = smov (%p52_p7, %s50_s27), 0 }
  0x26   : > { %1996 = sst [smem:[#allocation27_spill]] %s2014_s27  ;;  %p72_p11 = scmp.ne.s32.totalorder %s1661_s14, %s1657_s13 }
  0x27   : > { %p1822_p10 = por %p67_p9, %p66_p8  ;;  %s54_s29 = ssub.s32 %s1673_s17, %s2014_s27 }
  0x28   : > { %p294_p12 = scmp.eq.s32.totalorder %s1776_s19, 1  ;;  %p57_p13 = scmp.eq.s32.totalorder %s54_s29, 0 }
  0x29   : > { %p1833_p0 = por %p73_p1, %p72_p11  ;;  %p300_p5 = scmp.eq.s32.totalorder %s1085_s24, 1 }
  0x2a   : > { %p1837_p2 = por %p294_p12, %p66_p8  ;;  %p1319_p7 = scmp.lt.s32.totalorder %s1677_s18, 2 }
  0x2b   : > { %s1842_s20 = scalar_select %p57_p13, %s1665_s15, %s59_s22  }
  0x2c   : > { %s1999_s12 = scalar_select %p1837_p2, 1, 0 }
  0x2d   : > { %2001 = sst [smem:[#allocation29_spill]] %s1842_s20  ;;  %p1844_p6 = por %p300_p5, %p72_p11 }
  0x2e   : > { %2000 = sst [smem:[#allocation28_spill]] %s1999_s12  ;;  %s386_s30 = sand.u32 1, %s1665_s15  }
  0x2f   : > { %s2002_s26 = scalar_select %p1844_p6, 1, 0 }
  0x30   : > { %s1093_s25 = sshll.u32 %s1673_s17, 3  ;;  %s1092_s28 = sshll.u32 %s386_s30, 3 }
  0x31   : > { %2003 = sst [smem:[#allocation30_spill]] %s2002_s26  ;;  %s395_s29 = scalar_lea.hbm %s1965_s0, %s1093_s25 }
  0x32   : > { %s397_s6 = sshll.u32 %s395_s29, 4  ;;  %s390_s8 = scalar_lea.vmem [#allocation6], %s1092_s28  ;;  %s398_s6 = int_to_ptr.hbm [resolvable:$true] %s397_s6 }
  0x33   : > { %s399_s27 = sshll.u32 %s390_s8, 4  ;;  %p1305_p8 = pnand %p1319_p7, %p1822_p10  ;;  %s400_s27 = int_to_ptr.vmem [resolvable:$true] %s399_s27 }
  0x34   : > { %s415_s20 = scalar_lea.hbm %s1966_s1, %s1093_s25  ;;  %s406_s26 = sand.u32 1, %s1677_s18  }
  0x35   : > { %s387_s13 = scalar_lea.sflag [#allocation7], %s386_s30  ;;  %s417_s17 = sshll.u32 %s415_s20, 4  ;;  %s418_s17 = int_to_ptr.hbm [resolvable:$true] %s417_s17 }
  0x36   : > { %1307 = dma.hbm_to_vmem [thread:$0]  (!%p1305_p8), %s398_s6, 128, %s400_s27, %s387_s13  }
  0x37   : > { %s410_s15 = scalar_lea.vmem [#allocation9], %s1092_s28  ;;  %s407_s11 = scalar_lea.sflag [#allocation10], %s406_s26 }
  0x38   : > { %s419_s12 = sshll.u32 %s410_s15, 4  ;;  %428 = sbr.rel (%p1784_p3) target bundleno = 983 (0x3d7), region = 60  ;;  %s420_s12 = int_to_ptr.vmem [resolvable:$true] %s419_s12 }
  0x39   : > { %1310 = dma.hbm_to_vmem [thread:$0]  (!%p1305_p8), %s418_s17, 128, %s420_s12, %s407_s11  }
  0x3a   : > { %s1863_s8 = sand.u32 (!%p1784_p3), 1, %s1661_s14  }
  0x3b   : > { %s1866_s4 = sshll.u32 (!%p1784_p3), %s1863_s8, 3  ;;  %s431_s6 = scalar_lea.sflag (!%p1784_p3), [#allocation7], %s1863_s8 }
  0x3c   : > { %s434_s13 = scalar_lea.vmem (!%p1784_p3), [#allocation6], %s1866_s4 }
  0x3d   : > { %1632 = dma.done.wait (%p1833_p0), %s431_s6, 128  }
  0x3e   : > { %1634 = vsyncadd (%p1833_p0), %s431_s6, 4294967168  ;;  %s440_s15 = sand.u32 1, %s1776_s19   ;;  %s444_s23 = scalar_lea.vmem [#allocation9], %s1866_s4 }
  0x3f   : > { %s441_s17 = scalar_lea.sflag [#allocation10], %s440_s15 }
  0x40   : > { %1636 = dma.done.wait (%p1833_p0), %s441_s17, 128  }
  0x41   : > { %1638 = vsyncadd (%p1833_p0), %s441_s17, 4294967168 }
  0x42   : > { %1640 = dma.done.wait (%p73_p1), [#allocation10], 16  }
  0x43   : > { %1642 = vsyncadd (%p73_p1), [#allocation10], 4294967280 }
  0x44   : > { %1644 = dma.done.wait (%p73_p1), [#allocation13], 3072  }
  0x45   : > { %1646 = vsyncadd (%p73_p1), [#allocation13], 4294964224 }
  0x46   : > { %1648 = dma.done.wait (%p73_p1), [#allocation16], 1024  }
  0x47   : > { %1650 = vsyncadd (%p73_p1), [#allocation16], 4294966272  ;;  %v1244_v0 = vld [vmem:[#allocation12 + $0x38] sm:$0xff]  ;;  %v1194_v1 = vld [vmem:[#allocation14 + $0x70] sm:$0xf]  ;;  %vm608_vm0 = vcmask 7168  }
  0x48   : > { %v1260_v2 = vld [vmem:[#allocation14 + $0x74] sm:$0xf0]  ;;  %v1186_v4 = vld [vmem:[#allocation14 + $0x60] sm:$0xf]  ;;  %v1258_v5 = vld [vmem:[#allocation14 + $0x64] sm:$0xf0]  ;;  %593 = vmatpush.bf16.msra.mxu0 %v1244_v0 }
  0x49   : > { %v1195_v3 = vor.u32 %v1260_v2, %v1194_v1  ;;  %v1243_v6 = vld [vmem:[#allocation12 + $0x30] sm:$0xff]  ;;  %v1187_v7 = vor.u32 %v1258_v5, %v1186_v4  ;;  %v1256_v9 = vld [vmem:[#allocation14 + $0x54] sm:$0xf0]  ;;  %v1242_v10 = vld [vmem:[#allocation12 + $0x28] sm:$0xff]  ;;  %v1687_v2 = vmov -inf   ;;  %vm770_vm1 = vcmask 64512  }
  0x4a   : > { %v1178_v8 = vld [vmem:[#allocation14 + $0x50] sm:$0xf]  ;;  %v1170_v12 = vld [vmem:[#allocation14 + $0x40] sm:$0xf]  ;;  %v1254_v13 = vld [vmem:[#allocation14 + $0x44] sm:$0xf0] }
  0x4b   : > { %727 = vmatpush.bf16.msra.mxu1 %v1195_v3  ;;  %v1179_v11 = vor.u32 %v1256_v9, %v1178_v8  ;;  %v1241_v14 = vld [vmem:[#allocation12 + $0x20] sm:$0xff]  ;;  %v1171_v15 = vor.u32 %v1254_v13, %v1170_v12  ;;  %v1162_v16 = vld [vmem:[#allocation14 + $0x30] sm:$0xf]  ;;  %v1252_v17 = vld [vmem:[#allocation14 + $0x34] sm:$0xf0]  ;;  %609 = vst.msk [vmem:[#allocation3] sm:$0xff] %vm608_vm0, %v1687_v2 }
  0x4c   : > { %594 = vmatpush.bf16.msra.mxu0 %v1243_v6  ;;  %v1387_v18 = vld [vmem:[%s1967_s2] ss:$0 sm:$0xff]  ;;  %v1240_v19 = vld [vmem:[#allocation12 + $0x18] sm:$0xff]  ;;  %v1163_v22 = vor.u32 %v1252_v17, %v1162_v16  ;;  %v1154_v24 = vld [vmem:[#allocation14 + $0x20] sm:$0xf]  ;;  %vm805_vm2 = vcmask 1043456  }
  0x4d   : > { %v1897_v20 = vld [vmem:[%s434_s13] sm:$0xff]  ;;  %v612_v23 = vld [vmem:[%s444_s23] sm:$0xff]  ;;  %s1234_s28 = sshll.u32 %s1669_s16, 3  ;;  %s506_s13 = scalar_lea.vmem [#allocation17], %s1866_s4 }
  0x4e   : > { %v1389_v21 = vld [vmem:[%s1967_s2] ss:$0 sm:$0xff]  ;;  %v517_v26 = vmul.f32 %v1387_v18, %v1897_v20  ;;  %v1388_v27 = vld [vmem:[#allocation11] ss:$0 sm:$0xff]  ;;  %v1239_v28 = vld [vmem:[#allocation12 + $0x10] sm:$0xff]  ;;  %s934_s6 = scalar_lea.hbm %s1975_s10, %s1234_s28  ;;  %s936_s15 = sshll.u32 %s506_s13, 4  ;;  %s937_s15 = int_to_ptr.vmem [resolvable:$true] %s936_s15 }
  0x4f   : > { %728 = vmatpush.bf16.msra.mxu1 %v1187_v7  ;;  %v1250_v25 = vld [vmem:[#allocation14 + $0x24] sm:$0xf0]  ;;  %v617_v29 = vmul.f32 %v1389_v21, %v612_v23  ;;  %v1390_v30 = vld [vmem:[#allocation11] ss:$0 sm:$0xff]  ;;  %v1146_v32 = vld [vmem:[#allocation14 + $0x10] sm:$0xf] }
  0x50   : > { %595 = vmatpush.bf16.msra.mxu0 %v1242_v10  ;;  %v1155_v31 = vor.u32 %v1250_v25, %v1154_v24  ;;  %v1248_v33 = vld [vmem:[#allocation14 + $0x14] sm:$0xf0]  ;;  %v522_v34 = vadd.f32 %v1388_v27, %v517_v26  ;;  %v1238_v35 = vld [vmem:[#allocation12 + $0x8] sm:$0xff]  ;;  %v1138_v38 = vld [vmem:[#allocation14] sm:$0xf]  ;;  %v1688_v23 = vmov 0  }
  0x51   : > { %v622_v36 = vadd.f32 %v1390_v30, %v617_v29  ;;  %v1147_v37 = vor.u32 %v1248_v33, %v1146_v32  ;;  %v1246_v39 = vld [vmem:[#allocation14 + $0x4] sm:$0xf0]  ;;  %v1237_v41 = vld [vmem:[#allocation12] sm:$0xff]  ;;  %v1259_v58 = vld [vmem:[#allocation14 + $0x74] sm:$0xf]  ;;  %1384 = vset.pattern.permute.xlu0 %v1688_v23  ;;  %1385 = vset.pattern.permute.xlu1 %v1688_v23  ;;  %v1689_v24 = vmov 0.0  }
  0x52   : > { %v523_v40 = vmax.f32 %v522_v34, 0.0  ;;  %v1139_v43 = vor.u32 %v1246_v39, %v1138_v38  ;;  %v1908_v46 = vld [vmem:[%s1972_s7] sm:$0x3]  ;;  %v1196_v59 = vld [vmem:[#allocation14 + $0x78] sm:$0xf0]  ;;  %1386 = vset.pattern.permute.xlu2 %v1688_v23  ;;  %610 = vst.msk [vmem:[#allocation4] sm:$0xff] %vm608_vm0, %v1689_v24 }
  0x53   : > { %729 = vmatpush.bf16.msra.mxu1 %v1179_v11  ;;  %v623_v42 = vmax.f32 %v622_v36, 0.0  ;;  %v1391_v47 = vld [vmem:[%s1970_s5] ss:$0 sm:$0xff]  ;;  %v643_v48 = vperm.slane %v1908_v46, 0  ;;  %v1257_v60 = vld [vmem:[#allocation14 + $0x64] sm:$0xf]  ;;  %v1199_v61 = vor.u32 %v1259_v58, %v1196_v59 }
  0x54   : > { %596 = vmatpush.bf16.msra.mxu0 %v1241_v14  ;;  %v524_v44 = vpack.c.bf16 %v523_v40, %v523_v40  ;;  %v1188_v62 = vld [vmem:[#allocation14 + $0x68] sm:$0xf0]  ;;  %v1255_v0 = vld [vmem:[#allocation14 + $0x54] sm:$0xf]  ;;  %v1180_v1 = vld [vmem:[#allocation14 + $0x58] sm:$0xf0] }
  0x55   : > { %v624_v45 = vpack.c.bf16 %v623_v42, %v623_v42  ;;  %740 = vmatpush.bf16.msra.mxu2 %v1199_v61  ;;  %v1191_v63 = vor.u32 %v1257_v60, %v1188_v62  ;;  %v1183_v3 = vor.u32 %v1255_v0, %v1180_v1  ;;  %v1253_v4 = vld [vmem:[#allocation14 + $0x44] sm:$0xf]  ;;  %v1172_v5 = vld [vmem:[#allocation14 + $0x48] sm:$0xf0]  ;;  %v1251_v7 = vld [vmem:[#allocation14 + $0x34] sm:$0xf] }
  0x56   : > { %v1175_v6 = vor.u32 %v1253_v4, %v1172_v5  ;;  %v1164_v8 = vld [vmem:[#allocation14 + $0x38] sm:$0xf0]  ;;  %v1249_v10 = vld [vmem:[#allocation14 + $0x24] sm:$0xf]  ;;  %v1156_v11 = vld [vmem:[#allocation14 + $0x28] sm:$0xf0] }
  0x57   : > { %730 = vmatpush.bf16.msra.mxu1 %v1171_v15  ;;  %v1167_v9 = vor.u32 %v1251_v7, %v1164_v8  ;;  %v1159_v12 = vor.u32 %v1249_v10, %v1156_v11  ;;  %v1247_v13 = vld [vmem:[#allocation14 + $0x14] sm:$0xf]  ;;  %v1148_v14 = vld [vmem:[#allocation14 + $0x18] sm:$0xf0]  ;;  %v1245_v17 = vld [vmem:[#allocation14 + $0x4] sm:$0xf] }
  0x58   : > { %597 = vmatpush.bf16.msra.mxu0 %v1240_v19  ;;  %v1151_v15 = vor.u32 %v1247_v13, %v1148_v14  ;;  %v1140_v18 = vld [vmem:[#allocation14 + $0x8] sm:$0xf0]  ;;  %v644_v29 = vperm.slane %v1908_v46, 1  ;;  %v1261_v58 = vld [vmem:[#allocation15] sm:$0xff]  ;;  %v1392_v1 = vld [vmem:[%s1974_s9] ss:$0 sm:$0xff] }
  0x59   : > { %741 = vmatpush.bf16.msra.mxu2 %v1191_v63  ;;  %v1143_v21 = vor.u32 %v1245_v17, %v1140_v18  ;;  %v769_v25 = vld [vmem:[#allocation3] sm:$0xff]  ;;  %s938_s17 = sshll.u32 %s934_s6, 4  ;;  %s923_s16 = scalar_lea.sflag [#allocation8], %s1863_s8  ;;  %s939_s17 = int_to_ptr.hbm [resolvable:$true] %s938_s17 }
  0x5a   : > { %s1593_s23 = sshra.s32 %s939_s17, 4  ;;  %s1599_s4 = scalar_lea.hbm %s1975_s10, 16  ;;  %s1594_s23 = int_to_ptr.hbm [resolvable:$true] %s1593_s23 }
  0x5b   : > { %731 = vmatpush.bf16.msra.mxu1 %v1163_v22  ;;  %s1595_s19 = scalar_lea.hbm %s1594_s23, 8  ;;  %p1600_p10 = scmp.lt.s32.totalorder %s1594_s23, %s1975_s10 }
  0x5c   : > { %598 = vmatpush.bf16.msra.mxu0 %v1239_v28  ;;  %p1596_p1 = scmp.ne.s32.totalorder %s1594_s23, %s1595_s19  ;;  %p1601_p11 = scmp.lt.s32.totalorder %s1599_s4, %s1595_s19 }
  0x5d   : > { %742 = vmatpush.bf16.msra.mxu2 %v1183_v3 }
  0x5e   : > { %p1597_p3 = pnand %p1596_p1, %p1837_p2  ;;  %p1602_p12 = por %p1601_p11, %p1600_p10 }
  0x5f   : > { %732 = vmatpush.bf16.msra.mxu1 %v1155_v31 }
  0x60   : > { %599 = vmatpush.bf16.msra.mxu0 %v1238_v35  ;;  %p1598_p9 = pneg %p1597_p3 }
  0x61   : > { %743 = vmatpush.bf16.msra.mxu2 %v1175_v6 }
  0x62   : > { %p1603_p13 = pnand %p1602_p12, %p1598_p9 }
  0x63   : > { %733 = vmatpush.bf16.msra.mxu1 %v1147_v37 }
  0x64   : > { %600 = vmatpush.bf16.msra.mxu0 %v1237_v41 }
  0x65   : > { %744 = vmatpush.bf16.msra.mxu2 %v1167_v9 }
  0x67   : > { %734 = vmatpush.bf16.msra.mxu1 %v1139_v43  ;;  %601 = vmatmul.bf16.vlgmr.msra.gmra.mxu0 %v524_v44  ;;  %v1268_v43 = vld [vmem:[#allocation15 + $0x38] sm:$0xff] }
  0x68   : > { %v786_v44 = vld [vmem:[#allocation4] sm:$0xff] }
  0x69   : > { %745 = vmatpush.bf16.msra.mxu2 %v1159_v12 }
  0x6a   : > { %735 = vmatmul.bf16.vlgmr.msra.gmra.mxu1 %v624_v45 }
  0x6d   : > { %746 = vmatpush.bf16.msra.mxu2 %v1151_v15 }
  0x71   : > { %747 = vmatpush.bf16.msra.mxu2 %v1143_v21 }
  0x74   : > { %748 = vmatmul.bf16.vlgmr.msra.gmra.mxu2 %v624_v45  ;;  %v1267_v45 = vld [vmem:[#allocation15 + $0x30] sm:$0xff] }
  0xe4   : > { %v602_v49 = vpop.f32.mrf.mxu0 }
  0xe5   : > { %v603_v50 = vadd.f32 %v1391_v47, %v602_v49  ;;  %v1266_v49 = vld [vmem:[#allocation15 + $0x28] sm:$0xff] }
  0xe7   : > { %v736_v51 = vpop.f32.mrf.mxu1  ;;  %v606_v53 = vpack.c.bf16 %v603_v50, %v603_v50  ;;  %v1265_v50 = vld [vmem:[#allocation15 + $0x20] sm:$0xff] }
  0xe8   : > { %v737_v52 = vadd.f32 %v736_v51, %v643_v48  ;;  %v1264_v51 = vld [vmem:[#allocation15 + $0x18] sm:$0xff] }
  0xe9   : > { %607 = vst [vmem:[#allocation2] sm:$0xf] %v606_v53  ;;  %v1263_v53 = vld [vmem:[#allocation15 + $0x10] sm:$0xff] }
  0xea   : > { %v753_v54 = vpack.c.bf16 %v737_v52, %v737_v52 }
  0xec   : > { %763 = vmatpush.bf16.xpose.msrb.mxu0 %v753_v54  ;;  %v604_v55 = vpop.f32.mrf.mxu0 }
  0xef   : > { %v738_v56 = vpop.f32.mrf.mxu1 }
  0xf0   : > { %v755_v57 = vld [vmem:[#allocation2] sm:$0xf] }
  0xf1   : > { %v1262_v56 = vld [vmem:[#allocation15 + $0x8] sm:$0xff] }
  0xf3   : > { %764 = vmatmul.bf16.vlgmr.msrb.gmra.mxu0 %v755_v57 }
  0xf7   : > { %v749_v30 = vpop.f32.mrf.mxu2 }
  0xf8   : > { %v750_v31 = vadd.f32 %v749_v30, %v644_v29 }
  0xfa   : > { %v754_v32 = vpack.c.bf16 %v750_v31, %v750_v31 }
  0xfc   : > { %v807_v33 = vsel %vm805_vm2, %v754_v32, 0 }
  0xfd   : > { %816 = vmatpush.bf16.msra.mxu3 %v807_v33 }
  0xff   : > { %v751_v34 = vpop.f32.mrf.mxu2 }
 0x101   : > { %906 = vmatpush.bf16.msrb.mxu3 %v1268_v43 }
 0x105   : > { %907 = vmatpush.bf16.msrb.mxu3 %v1267_v45 }
 0x109   : > { %908 = vmatpush.bf16.msrb.mxu3 %v1266_v49 }
 0x10d   : > { %909 = vmatpush.bf16.msrb.mxu3 %v1265_v50 }
 0x111   : > { %910 = vmatpush.bf16.msrb.mxu3 %v1264_v51 }
 0x115   : > { %911 = vmatpush.bf16.msrb.mxu3 %v1263_v53 }
 0x119   : > { %912 = vmatpush.bf16.msrb.mxu3 %v1262_v56 }
 0x11d   : > { %913 = vmatpush.bf16.msrb.mxu3 %v1261_v58 }
 0x170   : > { %v765_v16 = vpop.f32.mrf.mxu0 }
 0x171   : > { %v771_v19 = vsel %vm770_vm1, %v765_v16, -inf }
 0x172   : > { %772 = vmax.xlane.f32.xlu0 %v771_v19 }
 0x178   : > { %v767_v22 = vpop.f32.mrf.mxu0 }
 0x1e5   : > { %v773_v26 = vpop.xlane.xlu0 %772 }
 0x1e6   : > { %v774_v27 = vmax.f32 %v769_v25, %v773_v26 }
 0x1e8   : > { %v775_v28 = vsub.f32 %v769_v25, %v774_v27  ;;  %824 = vst.msk [vmem:[#allocation3] sm:$0xff] %vm608_vm0, %v774_v27  ;;  %780 = vperm.xlu0 %1384, %v774_v27  }
 0x1ea   : > { %v776_v41 = vmul.f32 1.442695, %v775_v28 }
 0x25a   : > { %v781_v35 = vpop.permute.xlu0 %780 }
 0x25b   : > { %v783_v36 = vsub.f32 %v765_v16, %v781_v35 }
 0x25d   : > { %v784_v37 = vmul.f32 1.442695, %v783_v36 }
 0x25f   : > { %1393 = vpow2.f32 %v784_v37 }
 0x260   : > { %1395 = vpow2.f32 %v776_v41 }
 0x265   : > { %v1394_v38 = vpop.eup %1393 }
 0x266   : > { %v788_v39 = vsel %vm770_vm1, %v1394_v38, 0.0  ;;  %v801_v40 = vpack.c.bf16 %v1394_v38, %v1394_v38  ;;  %v1396_v42 = vpop.eup %1395 }
 0x267   : > { %789 = vadd.xlane.f32.xlu1 %v788_v39  ;;  %v787_v46 = vmul.f32 %v1396_v42, %v786_v44 }
 0x268   : > { %1200 = vmatmul.msk.bf16.vlgmr.msra.gmra.mxu3 %vm770_vm1, %v801_v40 }
 0x280   : > { %797 = vperm.xlu1 %1385, %v1396_v42  }
 0x2da   : > { %v790_v47 = vpop.xlane.xlu1 %789 }
 0x2db   : > { %v791_v48 = vadd.f32 %v790_v47, %v787_v46 }
 0x2dd   : > { %793 = vst.msk [vmem:[#allocation4] sm:$0xff] %vm608_vm0, %v791_v48 }
 0x2e4   : > { %v829_v52 = vld [vmem:[#allocation4] sm:$0xff] }
 0x2e5   : > { %1397 = vrcp.f32 %v829_v52 }
 0x2eb   : > { %v1398_v54 = vpop.eup %1397  ;;  %v818_v55 = vpop.f32.mrf.mxu3 }
 0x2ec   : > { %833 = vperm.xlu2 %1386, %v1398_v54  }
 0x2f2   : > { %v798_v59 = vpop.permute.xlu1 %797 }
 0x2f3   : > { %v820_v57 = vpop.f32.mrf.mxu3  ;;  %v800_v60 = vmul.f32 0.0, %v798_v59 }
 0x2f5   : > { %v822_v61 = vadd.f32 %v818_v55, %v800_v60 }
 0x346   : > { %v834_v62 = vpop.permute.xlu2 %833 }
 0x347   : > { %v836_v63 = vmul.f32 %v834_v62, %v822_v61 }
 0x349   : > { %v837_v0 = vpack.c.bf16 %v836_v63, %v836_v63 }
 0x34b   : > { %914 = vmatmul.bf16.vlgmr.msrb.gmra.mxu3 %v837_v0 }
 0x3ce   : > { %v915_v2 = vpop.f32.mrf.mxu3 }
 0x3cf   : > { %v916_v3 = vadd.f32 %v1392_v1, %v915_v2 }
 0x3d1   : > { %v920_v4 = vadd.f32 %v916_v3, %v1897_v20 }
 0x3d3   : > { %921 = vst [vmem:[%s506_s13] sm:$0xff] %v920_v4 }
 0x3d4   : > { %1606 = shalt.err (!%p1603_p13)
}
 0x3d5   : > { %1289 = dma.vmem_to_hbm [thread:$0]  (%p1837_p2), %s937_s15, 128, %s939_s17, %s923_s16  }
 0x3d6   : > { %v917_v20 = vpop.f32.mrf.mxu3 }
 0x3d7 PF: > { %s2005_s8 = sld [smem:[#allocation24_spill]]  ;;  %p1312_p0 = pnand %p1091_p4, %p1844_p6 }
 0x3d9   : > { %p1313_p5 = pneg %p1312_p0 }
 0x3dd   : > { %s950_s30 = sand.u32 1, %s2005_s8  }
 0x3de   : > { %s951_s25 = scalar_lea.sflag [#allocation8], %s950_s30 }
 0x3df   : > { %1652 = dma.done.wait (%p1313_p5), %s951_s25, 128  }
 0x3e0   : > { %1654 = vsyncadd (%p1313_p5), %s951_s25, 4294967168  ;;  %s31_s18 = sadd.s32 1, %s1677_s18   ;;  %s2007_s28 = sld [smem:[#allocation25_spill]] }
 0x3e1   : > { %p28_p7 = scmp.ge.s32.totalorder %s31_s18, 4   ;;  %s2008_s15 = sld [smem:[#allocation29_spill]] }
 0x3e2   : > { %s2009_s16 = sld [smem:[#allocation26_spill]]  ;;  %s2011_s13 = smov %s1661_s14 }
 0x3e3   : > { %s2010_s17 = sld [smem:[#allocation27_spill]]  ;;  %30 = sbr.rel (!%p28_p7) target bundleno = 15 (0xf), region = 142 }
 0x3e6   : > { %s2012_s14 = smov %s2007_s28 }
 0x3e8   :  { %957 = vsyncpa [#allocation7], 1 }
 0x3e9   :  { %959 = vsyncpa [#allocation7 + $0x1], 1 }
 0x3ea   :  { %960 = vsyncpa [#allocation10], 1 }
 0x3eb   :  { %962 = vsyncpa [#allocation10 + $0x1], 1 }
 0x3ec   :  { %963 = vsyncpa [#allocation13], 1 }
 0x3ed   :  { %964 = vsyncpa [#allocation16], 1 }
 0x3ee   :  { %965 = vsyncpa [#allocation8], 1 }
 0x3ef   :  { %967 = vsyncpa [#allocation8 + $0x1], 1 }

</bundles_post_ra>
